<compile_context>
chip_gen: v6e
topology: v6e:2x2x1
jax: 0.10.0
libtpu: 0.0.40
codegen_flags: <defaults>
</compile_context>

<pallas_src>
import jax
import jax.numpy as jnp
from jax.experimental import pallas as pl
from jax.experimental.pallas import tpu as pltpu


def coupling_kernel(x1_ref, x2_ref,
                    w1f_ref, b1f_ref, w2f_ref, b2f_ref,
                    w1g_ref, b1g_ref, w2g_ref, b2g_ref,
                    y1_ref, y2_ref):
    # Data blocks are [C, T]: channels on sublanes, lane-dense pixel tile.
    x1 = x1_ref[...]
    x2 = x2_ref[...]

    # F(x2): [hidden, C] @ [C, T] -> [hidden, T], f32 accumulation on the MXU.
    h = jnp.dot(w1f_ref[...], x2, preferred_element_type=jnp.float32) + b1f_ref[...]
    h = jax.nn.gelu(h, approximate=True)
    f_x2 = jnp.dot(w2f_ref[...], h, preferred_element_type=jnp.float32) + b2f_ref[...]
    y1 = x1.astype(jnp.float32) + f_x2

    # G(y1): [hidden, C] @ [C, T] -> [hidden, T]
    h2 = jnp.dot(w1g_ref[...], y1, preferred_element_type=jnp.float32) + b1g_ref[...]
    h2 = jax.nn.gelu(h2, approximate=True)
    g_y1 = jnp.dot(w2g_ref[...], h2, preferred_element_type=jnp.float32) + b2g_ref[...]
    y2 = x2.astype(jnp.float32) + g_y1

    y1_ref[...] = y1.astype(y1_ref.dtype)
    y2_ref[...] = y2.astype(y2_ref.dtype)


def _vmem_capacity_bytes():
    """Per-generation VMEM capacity; conservative (v7x) fallback."""
    try:
        info = pltpu.get_tpu_info()
        cap = getattr(info, "vmem_capacity_bytes", None)
        if cap:
            return int(cap)
    except Exception:
        pass
    return 64 * 1024 * 1024


def _round_up(x, m):
    return -(-x // m) * m


def _derive_tiling(hw, batch, c, hidden, itemsize, vmem_cap):
    """Pick (T, nsteps, hw_final, padded_c) for the pixel-tile pipeline.

    Per-lane VMEM footprint model (bytes / pixel lane):
      - 4 data blocks (x1, x2, y1, y2), sublane-padded, double-buffered
      - live f32 intermediates (~h, h2, result tiles):  ~4 * hidden * 4B
      - f32 working copies of the data blocks
    """
    hw_pad = _round_up(hw, 128)
    sublane = {4: 8, 2: 16, 1: 32}.get(itemsize, 8)
    padded_c = _round_up(c, sublane)

    per_lane = (2 * 4 * padded_c * itemsize      # double-buffered data blocks
                + 4 * hidden * 4                 # [hidden, T] f32 intermediates
                + 4 * padded_c * 4)              # f32 working copies
    budget = vmem_cap // 2                       # leave half of VMEM as headroom
    t_cap = max(128, (budget // per_lane) // 128 * 128)

    nsteps = -(-hw_pad // t_cap)
    # Keep enough total grid steps (>= ~4) so the pipeline can hide DMA.
    max_nsteps = hw_pad // 128
    while batch * nsteps < 4 and nsteps < max_nsteps:
        nsteps += 1

    tile = _round_up(-(-hw_pad // nsteps), 128)
    hw_final = nsteps * tile
    return tile, nsteps, hw_final, padded_c


def coupling_block(x1, x2, params):
    """x1, x2: [B, C, H, W] (NCHW, like PyTorch).  Returns (y1, y2) in NCHW."""
    B, C, H, W = x1.shape
    (w1f, b1f, w2f, b2f, w1g, b1g, w2g, b2g) = params
    hidden = w1f.shape[1]
    HW = H * W

    itemsize = jnp.dtype(x1.dtype).itemsize
    vmem_cap = _vmem_capacity_bytes()
    T, nsteps, hw_final, padded_C = _derive_tiling(HW, B, C, hidden, itemsize, vmem_cap)

    # NCHW -> [B, C, HW]: pure reshape, no transpose.  Pad the pixel axis up to
    # the tile grid so every store is lane-dense / unmasked; trim afterwards.
    x1r = x1.reshape(B, C, HW)
    x2r = x2.reshape(B, C, HW)
    if hw_final != HW:
        pad = ((0, 0), (0, 0), (0, hw_final - HW))
        x1r = jnp.pad(x1r, pad)
        x2r = jnp.pad(x2r, pad)

    # Transposed weights + column biases (tiny one-time host work), cast to the
    # input dtype so the MXU runs native-precision matmuls (f32 accumulation).
    cdt = x1.dtype
    w1f_t = w1f.T.astype(cdt)                    # [hidden, C]
    b1f_c = b1f.reshape(hidden, 1).astype(cdt)
    w2f_t = w2f.T.astype(cdt)                    # [C, hidden]
    b2f_c = b2f.reshape(C, 1).astype(cdt)
    w1g_t = w1g.T.astype(cdt)
    b1g_c = b1g.reshape(hidden, 1).astype(cdt)
    w2g_t = w2g.T.astype(cdt)
    b2g_c = b2g.reshape(C, 1).astype(cdt)

    data_spec = pl.BlockSpec((pl.Squeezed(), C, T), lambda b, j: (b, 0, j))
    full = lambda shape: pl.BlockSpec(shape, lambda b, j: (0, 0))

    # VMEM footprint (sublane padding + [hidden, T] f32 intermediates included).
    needed = (2 * 4 * padded_C * T * itemsize                   # double-buffered data blocks
              + 4 * hidden * T * 4                              # f32 intermediates (h, h2, ...)
              + 4 * padded_C * T * 4                            # f32 working copies
              + 2 * 2 * (2 * C * hidden + hidden + C) * 4)      # resident F/G weights + biases
    vmem_limit = int(min(0.9 * vmem_cap, max(32 * 1024 * 1024, 1.25 * needed)))

    y1r, y2r = pl.pallas_call(
        coupling_kernel,
        out_shape=(jax.ShapeDtypeStruct((B, C, hw_final), x1.dtype),
                   jax.ShapeDtypeStruct((B, C, hw_final), x2.dtype)),
        grid_spec=pltpu.PrefetchScalarGridSpec(
            num_scalar_prefetch=0,
            grid=(B, nsteps),
            in_specs=[
                data_spec, data_spec,
                full((hidden, C)), full((hidden, 1)),
                full((C, hidden)), full((C, 1)),
                full((hidden, C)), full((hidden, 1)),
                full((C, hidden)), full((C, 1)),
            ],
            out_specs=[data_spec, data_spec],
        ),
        compiler_params=pltpu.CompilerParams(
            dimension_semantics=("parallel", "parallel"),
            vmem_limit_bytes=vmem_limit),
    )(x1r, x2r, w1f_t, b1f_c, w2f_t, b2f_c, w1g_t, b1g_c, w2g_t, b2g_c)

    if hw_final != HW:
        y1r = y1r[..., :HW]
        y2r = y2r[..., :HW]
    return y1r.reshape(B, C, H, W), y2r.reshape(B, C, H, W)


def reference(x1, x2, params):
    """Plain-JAX reference of the same forward (layout-agnostic)."""
    (w1f, b1f, w2f, b2f, w1g, b1g, w2g, b2g) = params

    def mlp(x, w1, b1, w2, b2):
        xr = jnp.transpose(x, (0, 2, 3, 1))
        h = jax.nn.gelu(xr @ w1 + b1[0], approximate=True)
        o = h @ w2 + b2[0]
        return jnp.transpose(o, (0, 3, 1, 2))

    y1 = x1 + mlp(x2, w1f, b1f, w2f, b2f)
    y2 = x2 + mlp(y1, w1g, b1g, w2g, b2g)
    return y1, y2


if __name__ == "__main__":
    B, C, H, W = 2, 4, 16, 16
    hidden = 32
    key = jax.random.PRNGKey(0)
    ks = jax.random.split(key, 10)

    x1 = jax.random.normal(ks[0], (B, C, H, W), jnp.float32)
    x2 = jax.random.normal(ks[1], (B, C, H, W), jnp.float32)

    scale = 0.1
    params = (
        scale * jax.random.normal(ks[2], (C, hidden), jnp.float32),  # W1_f
        scale * jax.random.normal(ks[3], (1, hidden), jnp.float32),  # b1_f
        scale * jax.random.normal(ks[4], (hidden, C), jnp.float32),  # W2_f
        scale * jax.random.normal(ks[5], (1, C), jnp.float32),       # b2_f
        scale * jax.random.normal(ks[6], (C, hidden), jnp.float32),  # W1_g
        scale * jax.random.normal(ks[7], (1, hidden), jnp.float32),  # b1_g
        scale * jax.random.normal(ks[8], (hidden, C), jnp.float32),  # W2_g
        scale * jax.random.normal(ks[9], (1, C), jnp.float32),       # b2_g
    )

    y1, y2 = coupling_block(x1, x2, params)
    jax.block_until_ready((y1, y2))

    r1, r2 = reference(x1, x2, params)
    assert y1.shape == (B, C, H, W) and y2.shape == (B, C, H, W)
    assert jnp.allclose(y1, r1, atol=1e-5, rtol=1e-5)
    assert jnp.allclose(y2, r2, atol=1e-5, rtol=1e-5)

    # TODO(synk): backward pass (InvertibleCouplingLayer.backward / OutputHooks
    # activation-reconstruction machinery) is autograd plumbing, not part of
    # the forward kernel.
    print("KERNEL_OK")
</pallas_src>

<mosaic_0001>
module attributes {stable_mosaic.version = 11 : i64} {
  func.func @coupling_kernel(%arg0: i32, %arg1: i32, %arg2: memref<1x4x128xf32, #tpu.memory_space<vmem>>, %arg3: memref<1x4x128xf32, #tpu.memory_space<vmem>>, %arg4: memref<32x4xf32, #tpu.memory_space<vmem>>, %arg5: memref<32x1xf32, #tpu.memory_space<vmem>>, %arg6: memref<4x32xf32, #tpu.memory_space<vmem>>, %arg7: memref<4x1xf32, #tpu.memory_space<vmem>>, %arg8: memref<32x4xf32, #tpu.memory_space<vmem>>, %arg9: memref<32x1xf32, #tpu.memory_space<vmem>>, %arg10: memref<4x32xf32, #tpu.memory_space<vmem>>, %arg11: memref<4x1xf32, #tpu.memory_space<vmem>>, %arg12: memref<1x4x128xf32, #tpu.memory_space<vmem>>, %arg13: memref<1x4x128xf32, #tpu.memory_space<vmem>>) attributes {dimension_semantics = [#tpu.dimension_semantics<parallel>, #tpu.dimension_semantics<parallel>], iteration_bounds = array<i64: 2, 2>, scalar_prefetch = 0 : i64, scratch_operands = 0 : i64, tpu.core_type = #tpu.core_type<tc>, window_params = [{transform_indices = @transform_0, window_bounds = array<i64: 1, 4, 128>}, {transform_indices = @transform_1, window_bounds = array<i64: 1, 4, 128>}, {pipeline_mode = #tpu.pipeline_mode<synchronous>, transform_indices = @transform_2, window_bounds = array<i64: 32, 4>}, {pipeline_mode = #tpu.pipeline_mode<synchronous>, transform_indices = @transform_3, window_bounds = array<i64: 32, 1>}, {pipeline_mode = #tpu.pipeline_mode<synchronous>, transform_indices = @transform_4, window_bounds = array<i64: 4, 32>}, {pipeline_mode = #tpu.pipeline_mode<synchronous>, transform_indices = @transform_5, window_bounds = array<i64: 4, 1>}, {pipeline_mode = #tpu.pipeline_mode<synchronous>, transform_indices = @transform_6, window_bounds = array<i64: 32, 4>}, {pipeline_mode = #tpu.pipeline_mode<synchronous>, transform_indices = @transform_7, window_bounds = array<i64: 32, 1>}, {pipeline_mode = #tpu.pipeline_mode<synchronous>, transform_indices = @transform_8, window_bounds = array<i64: 4, 32>}, {pipeline_mode = #tpu.pipeline_mode<synchronous>, transform_indices = @transform_9, window_bounds = array<i64: 4, 1>}, {transform_indices = @transform_10, window_bounds = array<i64: 1, 4, 128>}, {transform_indices = @transform_11, window_bounds = array<i64: 1, 4, 128>}]} {
    %c0 = arith.constant 0 : index
    %c0_0 = arith.constant 0 : index
    %c0_1 = arith.constant 0 : index
    %0 = vector.load %arg2[%c0, %c0_0, %c0_1] : memref<1x4x128xf32, #tpu.memory_space<vmem>>, vector<1x4x128xf32>
    %1 = vector.shape_cast %0 : vector<1x4x128xf32> to vector<4x128xf32>
    %c0_2 = arith.constant 0 : index
    %c0_3 = arith.constant 0 : index
    %c0_4 = arith.constant 0 : index
    %2 = vector.load %arg3[%c0_2, %c0_3, %c0_4] : memref<1x4x128xf32, #tpu.memory_space<vmem>>, vector<1x4x128xf32>
    %3 = vector.shape_cast %2 : vector<1x4x128xf32> to vector<4x128xf32>
    %c0_5 = arith.constant 0 : index
    %c0_6 = arith.constant 0 : index
    %4 = vector.load %arg4[%c0_5, %c0_6] : memref<32x4xf32, #tpu.memory_space<vmem>>, vector<32x4xf32>
    %cst = arith.constant dense<0.000000e+00> : vector<32x128xf32>
    %5 = tpu.matmul %4, %3, %cst {dimension_numbers = #tpu.dot_dimension_numbers<[1], [0], [0], [1], [0, 0, 1, 1], [], []>} : vector<32x4xf32>, vector<4x128xf32>, vector<32x128xf32> -> vector<32x128xf32>
    %c0_7 = arith.constant 0 : index
    %c0_8 = arith.constant 0 : index
    %6 = vector.load %arg5[%c0_7, %c0_8] : memref<32x1xf32, #tpu.memory_space<vmem>>, vector<32x1xf32>
    %7 = vector.broadcast %6 : vector<32x1xf32> to vector<32x128xf32>
    %8 = arith.addf %5, %7 : vector<32x128xf32>
    %9 = arith.mulf %8, %8 : vector<32x128xf32>
    %10 = arith.mulf %8, %9 : vector<32x128xf32>
    %cst_9 = arith.constant 4.471500e-02 : f32
    %11 = vector.broadcast %cst_9 : f32 to vector<32x128xf32>
    %12 = arith.mulf %11, %10 : vector<32x128xf32>
    %13 = arith.addf %8, %12 : vector<32x128xf32>
    %cst_10 = arith.constant 0.797884583 : f32
    %14 = vector.broadcast %cst_10 : f32 to vector<32x128xf32>
    %15 = arith.mulf %14, %13 : vector<32x128xf32>
    %16 = math.tanh %15 : vector<32x128xf32>
    %cst_11 = arith.constant 1.000000e+00 : f32
    %17 = vector.broadcast %cst_11 : f32 to vector<32x128xf32>
    %18 = arith.addf %17, %16 : vector<32x128xf32>
    %cst_12 = arith.constant 5.000000e-01 : f32
    %19 = vector.broadcast %cst_12 : f32 to vector<32x128xf32>
    %20 = arith.mulf %19, %18 : vector<32x128xf32>
    %21 = arith.mulf %8, %20 : vector<32x128xf32>
    %c0_13 = arith.constant 0 : index
    %c0_14 = arith.constant 0 : index
    %22 = vector.load %arg6[%c0_13, %c0_14] : memref<4x32xf32, #tpu.memory_space<vmem>>, vector<4x32xf32>
    %cst_15 = arith.constant dense<0.000000e+00> : vector<4x128xf32>
    %23 = tpu.matmul %22, %21, %cst_15 {dimension_numbers = #tpu.dot_dimension_numbers<[1], [0], [0], [1], [0, 0, 1, 1], [], []>} : vector<4x32xf32>, vector<32x128xf32>, vector<4x128xf32> -> vector<4x128xf32>
    %c0_16 = arith.constant 0 : index
    %c0_17 = arith.constant 0 : index
    %24 = vector.load %arg7[%c0_16, %c0_17] : memref<4x1xf32, #tpu.memory_space<vmem>>, vector<4x1xf32>
    %25 = vector.broadcast %24 : vector<4x1xf32> to vector<4x128xf32>
    %26 = arith.addf %23, %25 : vector<4x128xf32>
    %27 = arith.addf %1, %26 : vector<4x128xf32>
    %c0_18 = arith.constant 0 : index
    %c0_19 = arith.constant 0 : index
    %28 = vector.load %arg8[%c0_18, %c0_19] : memref<32x4xf32, #tpu.memory_space<vmem>>, vector<32x4xf32>
    %cst_20 = arith.constant dense<0.000000e+00> : vector<32x128xf32>
    %29 = tpu.matmul %28, %27, %cst_20 {dimension_numbers = #tpu.dot_dimension_numbers<[1], [0], [0], [1], [0, 0, 1, 1], [], []>} : vector<32x4xf32>, vector<4x128xf32>, vector<32x128xf32> -> vector<32x128xf32>
    %c0_21 = arith.constant 0 : index
    %c0_22 = arith.constant 0 : index
    %30 = vector.load %arg9[%c0_21, %c0_22] : memref<32x1xf32, #tpu.memory_space<vmem>>, vector<32x1xf32>
    %31 = vector.broadcast %30 : vector<32x1xf32> to vector<32x128xf32>
    %32 = arith.addf %29, %31 : vector<32x128xf32>
    %33 = arith.mulf %32, %32 : vector<32x128xf32>
    %34 = arith.mulf %32, %33 : vector<32x128xf32>
    %cst_23 = arith.constant 4.471500e-02 : f32
    %35 = vector.broadcast %cst_23 : f32 to vector<32x128xf32>
    %36 = arith.mulf %35, %34 : vector<32x128xf32>
    %37 = arith.addf %32, %36 : vector<32x128xf32>
    %cst_24 = arith.constant 0.797884583 : f32
    %38 = vector.broadcast %cst_24 : f32 to vector<32x128xf32>
    %39 = arith.mulf %38, %37 : vector<32x128xf32>
    %40 = math.tanh %39 : vector<32x128xf32>
    %cst_25 = arith.constant 1.000000e+00 : f32
    %41 = vector.broadcast %cst_25 : f32 to vector<32x128xf32>
    %42 = arith.addf %41, %40 : vector<32x128xf32>
    %cst_26 = arith.constant 5.000000e-01 : f32
    %43 = vector.broadcast %cst_26 : f32 to vector<32x128xf32>
    %44 = arith.mulf %43, %42 : vector<32x128xf32>
    %45 = arith.mulf %32, %44 : vector<32x128xf32>
    %c0_27 = arith.constant 0 : index
    %c0_28 = arith.constant 0 : index
    %46 = vector.load %arg10[%c0_27, %c0_28] : memref<4x32xf32, #tpu.memory_space<vmem>>, vector<4x32xf32>
    %cst_29 = arith.constant dense<0.000000e+00> : vector<4x128xf32>
    %47 = tpu.matmul %46, %45, %cst_29 {dimension_numbers = #tpu.dot_dimension_numbers<[1], [0], [0], [1], [0, 0, 1, 1], [], []>} : vector<4x32xf32>, vector<32x128xf32>, vector<4x128xf32> -> vector<4x128xf32>
    %c0_30 = arith.constant 0 : index
    %c0_31 = arith.constant 0 : index
    %48 = vector.load %arg11[%c0_30, %c0_31] : memref<4x1xf32, #tpu.memory_space<vmem>>, vector<4x1xf32>
    %49 = vector.broadcast %48 : vector<4x1xf32> to vector<4x128xf32>
    %50 = arith.addf %47, %49 : vector<4x128xf32>
    %51 = arith.addf %3, %50 : vector<4x128xf32>
    %c0_32 = arith.constant 0 : index
    %c0_33 = arith.constant 0 : index
    %c0_34 = arith.constant 0 : index
    %52 = vector.load %arg12[%c0_32, %c0_33, %c0_34] : memref<1x4x128xf32, #tpu.memory_space<vmem>>, vector<1x4x128xf32>
    %53 = vector.shape_cast %52 : vector<1x4x128xf32> to vector<4x128xf32>
    %54 = vector.shape_cast %27 : vector<4x128xf32> to vector<1x4x128xf32>
    tpu.vector_store %arg12[%c0_32, %c0_33, %c0_34], %54 {strides = array<i32>} : memref<1x4x128xf32, #tpu.memory_space<vmem>>, vector<1x4x128xf32>,
    %c0_35 = arith.constant 0 : index
    %c0_36 = arith.constant 0 : index
    %c0_37 = arith.constant 0 : index
    %55 = vector.load %arg13[%c0_35, %c0_36, %c0_37] : memref<1x4x128xf32, #tpu.memory_space<vmem>>, vector<1x4x128xf32>
    %56 = vector.shape_cast %55 : vector<1x4x128xf32> to vector<4x128xf32>
    %57 = vector.shape_cast %51 : vector<4x128xf32> to vector<1x4x128xf32>
    tpu.vector_store %arg13[%c0_35, %c0_36, %c0_37], %57 {strides = array<i32>} : memref<1x4x128xf32, #tpu.memory_space<vmem>>, vector<1x4x128xf32>,
    return
  }
  func.func @transform_0(%arg0: i32, %arg1: i32) -> (i32, i32, i32) {
    %c0_i32 = arith.constant 0 : i32
    %c0_i32_0 = arith.constant 0 : i32
    return %arg0, %c0_i32, %arg1 : i32, i32, i32
  }
  func.func @transform_1(%arg0: i32, %arg1: i32) -> (i32, i32, i32) {
    %c0_i32 = arith.constant 0 : i32
    %c0_i32_0 = arith.constant 0 : i32
    return %arg0, %c0_i32, %arg1 : i32, i32, i32
  }
  func.func @transform_2(%arg0: i32, %arg1: i32) -> (i32, i32) {
    %c0_i32 = arith.constant 0 : i32
    %c0_i32_0 = arith.constant 0 : i32
    %c0_i32_1 = arith.constant 0 : i32
    return %c0_i32, %c0_i32_0 : i32, i32
  }
  func.func @transform_3(%arg0: i32, %arg1: i32) -> (i32, i32) {
    %c0_i32 = arith.constant 0 : i32
    %c0_i32_0 = arith.constant 0 : i32
    %c0_i32_1 = arith.constant 0 : i32
    return %c0_i32, %c0_i32_0 : i32, i32
  }
  func.func @transform_4(%arg0: i32, %arg1: i32) -> (i32, i32) {
    %c0_i32 = arith.constant 0 : i32
    %c0_i32_0 = arith.constant 0 : i32
    %c0_i32_1 = arith.constant 0 : i32
    return %c0_i32, %c0_i32_0 : i32, i32
  }
  func.func @transform_5(%arg0: i32, %arg1: i32) -> (i32, i32) {
    %c0_i32 = arith.constant 0 : i32
    %c0_i32_0 = arith.constant 0 : i32
    %c0_i32_1 = arith.constant 0 : i32
    return %c0_i32, %c0_i32_0 : i32, i32
  }
  func.func @transform_6(%arg0: i32, %arg1: i32) -> (i32, i32) {
    %c0_i32 = arith.constant 0 : i32
    %c0_i32_0 = arith.constant 0 : i32
    %c0_i32_1 = arith.constant 0 : i32
    return %c0_i32, %c0_i32_0 : i32, i32
  }
  func.func @transform_7(%arg0: i32, %arg1: i32) -> (i32, i32) {
    %c0_i32 = arith.constant 0 : i32
    %c0_i32_0 = arith.constant 0 : i32
    %c0_i32_1 = arith.constant 0 : i32
    return %c0_i32, %c0_i32_0 : i32, i32
  }
  func.func @transform_8(%arg0: i32, %arg1: i32) -> (i32, i32) {
    %c0_i32 = arith.constant 0 : i32
    %c0_i32_0 = arith.constant 0 : i32
    %c0_i32_1 = arith.constant 0 : i32
    return %c0_i32, %c0_i32_0 : i32, i32
  }
  func.func @transform_9(%arg0: i32, %arg1: i32) -> (i32, i32) {
    %c0_i32 = arith.constant 0 : i32
    %c0_i32_0 = arith.constant 0 : i32
    %c0_i32_1 = arith.constant 0 : i32
    return %c0_i32, %c0_i32_0 : i32, i32
  }
  func.func @transform_10(%arg0: i32, %arg1: i32) -> (i32, i32, i32) {
    %c0_i32 = arith.constant 0 : i32
    %c0_i32_0 = arith.constant 0 : i32
    return %arg0, %c0_i32, %arg1 : i32, i32, i32
  }
  func.func @transform_11(%arg0: i32, %arg1: i32) -> (i32, i32, i32) {
    %c0_i32 = arith.constant 0 : i32
    %c0_i32_0 = arith.constant 0 : i32
    return %arg0, %c0_i32, %arg1 : i32, i32, i32
  }
}

</mosaic_0001>

<bundles_post_ra>
// kernel: tpu_custom_call.1
= control target key start
LH: loop header
LB: loop body
LE: loop exit
PB: predicated region body
PF: predicated region fallthrough
CT: control target
= control target key end

     0   :  { %s1752_s0 = inlined_call_operand.vmem [shape: f32[2,4,256], index: 0, kind: input, shape index: {}]   ;;  %s1753_s1 = inlined_call_operand.vmem [shape: f32[2,4,256], index: 1, kind: input, shape index: {}]   ;;  %s1754_s2 = inlined_call_operand.vmem [shape: f32[32,4], index: 2, kind: input, shape index: {}]   ;;  %s1755_s3 = inlined_call_operand.vmem [shape: f32[32,1], index: 3, kind: input, shape index: {}]   ;;  %s1756_s4 = inlined_call_operand.vmem [shape: f32[4,32], index: 4, kind: input, shape index: {}]   ;;  %s1757_s5 = inlined_call_operand.vmem [shape: f32[4,1], index: 5, kind: input, shape index: {}]   ;;  %s1758_s6 = inlined_call_operand.vmem [shape: f32[32,4], index: 6, kind: input, shape index: {}]   ;;  %s1759_s7 = inlined_call_operand.vmem [shape: f32[32,1], index: 7, kind: input, shape index: {}]   ;;  %s1760_s8 = inlined_call_operand.vmem [shape: f32[4,32], index: 8, kind: input, shape index: {}]   ;;  %s1761_s9 = inlined_call_operand.vmem [shape: f32[4,1], index: 9, kind: input, shape index: {}]   ;;  %s1762_s10 = inlined_call_operand.hbm [shape: f32[2,4,256], index: 10, kind: output, shape index: {0}]   ;;  %s1763_s11 = inlined_call_operand.hbm [shape: f32[2,4,256], index: 11, kind: output, shape index: {1}]  }
   0x1   :  { %1771 = sst [smem:[#allocation14_spill]] %s1752_s0 }
   0x2   :  { %17 = vsyncpa [#allocation3], 0 }
   0x3   :  { %19 = vsyncpa [#allocation3 + $0x1], 0 }
   0x4   :  { %20 = vsyncpa [#allocation5], 0 }
   0x5   :  { %22 = vsyncpa [#allocation5 + $0x1], 0  ;;  %s1492_s17 = smov 0   ;;  %s1494_s18 = smov 0  }
   0x6   :  { %s1496_s19 = smov 0   ;;  %s1498_s20 = smov 0  }
   0x7   :  { %s1500_s21 = smov 0   ;;  %s1502_s22 = smov 0  }
   0x8   :  { %s1504_s23 = smov 0   ;;  %s1506_s24 = smov 0  }
   0x9 LB: > { %1772 = sst [smem:[#allocation8_spill]] %s1405_s19  ;;  %s1117_s25 = sadd.s32 4294967295, %s1425_s24   ;;  %s1425_s24 = sphi %s1506_s24, %s28_s24   ;;  %s1421_s23 = sphi %s1504_s23, %s1788_s23   ;;  %s1417_s22 = sphi %s1502_s22, %s1787_s22   ;;  %s1413_s21 = sphi %s1500_s21, %s1786_s21   ;;  %s1409_s20 = sphi %s1498_s20, %s1785_s20   ;;  %s1405_s19 = sphi %s1496_s19, %s1784_s19   ;;  %s1401_s18 = sphi %s1494_s18, %s1790_s18   ;;  %s1397_s17 = sphi %s1492_s17, %s1789_s17  }
   0xa   : > { %1773 = sst [smem:[#allocation9_spill]] %s1417_s22  ;;  %s1118_s26 = sadd.s32 4294967294, %s1425_s24  }
   0xb   : > { %1774 = sst [smem:[#allocation10_spill]] %s1421_s23  ;;  %s37_s27 = sadd.s32 1, %s1417_s22 }
   0xc   : > { %p38_p0 = scmp.ge.s32.totalorder %s37_s27, 2  ;;  %s40_s28 = sadd.s32 1, %s1421_s23 }
   0xd   : > { %p283_p1 = scmp.ne.s32.totalorder %s1405_s19, %s1401_s18  ;;  %p284_p2 = scmp.eq.s32.totalorder %s1117_s25, 3 }
   0xe   : > { %s1792_s27 = smov (%p38_p0, %s37_s27), 0  ;;  %s1794_s28 = smov (!%p38_p0, %s40_s28), %s1421_s23 }
   0xf   : > { %1775 = sst [smem:[#allocation11_spill]] %s1792_s27  ;;  %s269_s29 = ssub.s32 %s1417_s22, %s1792_s27 }
  0x10   : > { %p1543_p3 = por %p284_p2, %p283_p1  ;;  %p42_p4 = scmp.ge.s32.totalorder %s1794_s28, 2 }
  0x11   : > { %p289_p5 = scmp.ne.s32.totalorder %s1401_s18, %s1397_s17  ;;  %p290_p6 = scmp.eq.s32.totalorder %s1118_s26, 3 }
  0x12   : > { %p1121_p7 = scmp.ge.s32.totalorder %s1425_s24, 1  ;;  %s1796_s28 = smov (%p42_p4, %s1794_s28), 0 }
  0x13   : > { %1777 = sst [smem:[#allocation12_spill]] %s1796_s28  ;;  %p1552_p8 = por %p290_p6, %p289_p5 }
  0x14   : > { %p382_p9 = scmp.lt.s32.totalorder %s1425_s24, 5  ;;  %s268_s13 = ssub.s32 %s1421_s23, %s1796_s28 }
  0x15   : > { %s273_s14 = sadd.s32 1, %s1405_s19  ;;  %s270_s15 = sor.u32 %s269_s29, %s268_s13 }
  0x16   : > { %p383_p10 = pnand %p1121_p7, %p382_p9  ;;  %p271_p11 = scmp.eq.s32.totalorder %s270_s15, 0 }
  0x17   : > { %p438_p12 = scmp.lt.s32.totalorder (!%p383_p10), %s1413_s21, 1  ;;  %p440_p13 = scmp.lt.s32.totalorder (!%p383_p10), %s1409_s20, 1 }
  0x18   : > { %s1561_s16 = scalar_select %p271_p11, %s1405_s19, %s273_s14  }
  0x19   : > { %386 = sbr.rel (%p383_p10) target bundleno = 920 (0x398), region = 60  ;;  %s1645_s22 = sand.u32 (!%p383_p10), 1, %s1401_s18  }
  0x1a   : > { %1779 = sst [smem:[#allocation13_spill]] %s1561_s16  ;;  %s1769_s26 = sshll.u32 (!%p383_p10), %s1645_s22, 2 }
  0x1b   : > { %s1780_s0 = sld [smem:[#allocation14_spill]] (!%p383_p10)  ;;  %s1662_s23 = scalar_lea.vmem (!%p383_p10), [#allocation2], %s1769_s26 }
  0x1c   : > { %s1430_s26 = smov (!%p383_p10), [#allocation2]  }
  0x1e   : > { %v456_v0 = vld [vmem:[%s1754_s2] sm:$0xff]  ;;  %vm484_vm0 = vcmask 31744   ;;  %v463_v1 = vld [vmem:[%s1755_s3 + $0x18] sm:$0xff]  ;;  %s439_s13 = scalar_select %p438_p12, %s1413_s21, 1  ;;  %v1427_v2 = vmov 0   ;;  %v461_v3 = vld [vmem:[%s1755_s3 + $0x8] sm:$0xff] }
  0x1f   : > { %1170 = vmatprep.mubr.msk.f32.mxu0 %vm484_vm0, %v456_v0  ;;  %1285 = vset.pattern.permute.xlu0 %v1427_v2  ;;  %s441_s27 = scalar_select %p440_p13, %s1409_s20, 1  ;;  %v462_v4 = vld [vmem:[%s1755_s3 + $0x10] sm:$0xff]  ;;  %v460_v5 = vld [vmem:[%s1755_s3] sm:$0xff]  ;;  %vm497_vm1 = vcmask 1043456   ;;  %v457_v7 = vld [vmem:[%s1754_s2 + $0x8] sm:$0xff]  ;;  %v1428_v16 = vmov 0.0  }
  0x20   : > { %1286 = vset.pattern.permute.xlu1 %v1427_v2  ;;  %481 = vperm.xlu0 %1285, %v463_v1   ;;  %s1124_s25 = sshll.u32 %s439_s13, 1  ;;  %v623_v8 = vld [vmem:[%s1757_s5] sm:$0xf]  ;;  %v458_v9 = vld [vmem:[%s1754_s2 + $0x10] sm:$0xff]  ;;  %v711_v10 = vld [vmem:[%s1759_s7 + $0x18] sm:$0xff]  ;;  %vm1429_vm2 = vmmov 0  }
  0x21   : > { %471 = vperm.xlu1 %1286, %v461_v3   ;;  %s1583_s28 = sadd.s32 %s1124_s25, %s441_s27  ;;  %v459_v11 = vld [vmem:[%s1754_s2 + $0x18] sm:$0xff]  ;;  %v710_v12 = vld [vmem:[%s1759_s7 + $0x10] sm:$0xff]  ;;  %v709_v13 = vld [vmem:[%s1759_s7 + $0x8] sm:$0xff]  ;;  %1176 = vmatprep.subr.mxu1 %v1428_v16  ;;  %vm629_vm3 = vcmask 261120   ;;  %s952_s27 = scalar_lea.sflag [#allocation3], %s1645_s22 }
  0x22   : > { %s1125_s29 = sshll.u32 %s1583_s28, 2  ;;  %v708_v14 = vld [vmem:[%s1759_s7] sm:$0xff]  ;;  %1184 = vmatprep.mubr.msk.f32.mxu1 %vm1429_vm2, %v1428_v16  ;;  %s972_s28 = sshll.u32 %s1662_s23, 4  ;;  %s973_s28 = int_to_ptr.vmem [resolvable:$true] %s972_s28 }
  0x23   : > { %s453_s19 = scalar_lea.vmem %s1753_s1, %s1125_s29  ;;  %v869_v15 = vld [vmem:[%s1761_s9] sm:$0xf]  ;;  %s445_s25 = scalar_lea.vmem %s1780_s0, %s1125_s29 }
  0x24   : > { %476 = vperm.xlu0 %1285, %v462_v4   ;;  %v1591_v6 = vld [vmem:[%s453_s19] sm:$0xf]  ;;  %s1303_s16 = scalar_lea.vmem %s973_s28, 64 }
  0x25   : > { %466 = vperm.xlu1 %1286, %v460_v5   ;;  %1168 = vmatprep.subr.msk.mxu0 %vm497_vm1, %v1591_v6  ;;  %v622_v1 = vld [vmem:[%s1756_s4] sm:$0xf]  ;;  %p1304_p0 = scmp.ne.s32.totalorder %s973_s28, %s1303_s16 }
  0x26   : > { %1169 = vmatpush3.msk.msra.mxu0 %vm497_vm1, %v1591_v6  ;;  %v704_v2 = vld [vmem:[%s1758_s6] sm:$0xff] }
  0x27   : > { %1171 = vmatmul.mubr.msk.f32.vlgmr.msra.gmra.mxu0 %vm484_vm0, %v457_v7  ;;  %v454_v4 = vld [vmem:[%s445_s25] sm:$0xf]  ;;  %s1142_s25 = sshll.u32 %s1413_s21, 1  ;;  %p1305_p1 = pnand %p1304_p0, %p1543_p3 }
  0x28   : > { %626 = vperm.xlu0 %1285, %v623_v8   ;;  %1173 = vmatprep.mubr.msk.f32.mxu0 %vm484_vm0, %v458_v9  ;;  %s1681_s14 = sadd.s32 %s1409_s20, %s1142_s25  ;;  %s1307_s21 = sshll.u32 %s1430_s26, 4  ;;  %s1308_s21 = int_to_ptr.vmem [resolvable:$false] %s1307_s21 }
  0x29   : > { %729 = vperm.xlu1 %1286, %v711_v10   ;;  %v705_v10 = vld [vmem:[%s1758_s6 + $0x8] sm:$0xff]  ;;  %s1770_s19 = sshll.u32 %s1681_s14, 6  ;;  %p1306_p2 = pneg %p1305_p1 }
  0x2a   : > { %s970_s13 = scalar_lea.hbm %s1762_s10, %s1770_s19  ;;  %s1309_s20 = scalar_lea.vmem %s1308_s21, 128 }
  0x2b   : > { %1174 = vmatmul.mubr.msk.f32.gmra.mxu0 %vm484_vm0, %v459_v11  ;;  %v706_v11 = vld [vmem:[%s1758_s6 + $0x10] sm:$0xff]  ;;  %p1310_p4 = scmp.lt.s32.totalorder %s973_s28, %s1308_s21  ;;  %p1311_p5 = scmp.lt.s32.totalorder %s1309_s20, %s1303_s16 }
  0x2c   : > { %724 = vperm.xlu0 %1285, %v710_v12   ;;  %1189 = vmatprep.mubr.msk.f32.mxu0 %vm484_vm0, %v704_v2  ;;  %v707_v12 = vld [vmem:[%s1758_s6 + $0x18] sm:$0xff] }
  0x2d   : > { %719 = vperm.xlu1 %1286, %v709_v13   ;;  %p1312_p6 = por %p1311_p5, %p1310_p4 }
  0x2f   : > { %p1313_p7 = pnand %p1312_p6, %p1306_p2 }
  0x30   : > { %714 = vperm.xlu0 %1285, %v708_v14  }
  0x31   : > { %872 = vperm.xlu1 %1286, %v869_v15  }
  0x9b   : > { %v482_v18 = vpop.permute.xlu0 %481 }
  0x9c   : > { %v472_v17 = vpop.permute.xlu1 %471 }
  0x9f   : > { %v477_v29 = vpop.permute.xlu0 %476 }
  0xa0   : > { %v467_v21 = vpop.permute.xlu1 %466 }
  0xa3   : > { %v627_v3 = vpop.permute.xlu0 %626 }
  0xa4   : > { %v730_v13 = vpop.permute.xlu1 %729 }
  0xa7   : > { %v725_v14 = vpop.permute.xlu0 %724 }
  0xa8   : > { %v720_v15 = vpop.permute.xlu1 %719 }
  0xe7   : > { %v1172_v19 = vpop.f32.mrf.mxu0 }
  0xe8   : > { %v573_v20 = vadd.f32 %v1172_v19, %v472_v17  ;;  %v715_v19 = vpop.permute.xlu0 %714 }
  0xe9   : > { %v567_v22 = vpop.f32.mrf.mxu0 }
  0xea   : > { %v587_v23 = vmul.f32 %v573_v20, %v573_v20  ;;  %v568_v24 = vadd.f32 %v567_v22, %v467_v21 }
  0xeb   : > { %v1175_v25 = vpop.f32.mrf.mxu0 }
  0xec   : > { %v591_v26 = vmul.f32 %v587_v23, %v573_v20  ;;  %v586_v27 = vmul.f32 %v568_v24, %v568_v24  ;;  %v583_v28 = vadd.f32 %v1175_v25, %v482_v18 }
  0xed   : > { %v577_v30 = vpop.f32.mrf.mxu0 }
  0xee   : > { %v595_v31 = vmul.f32 0.044715, %v591_v26  ;;  %v590_v32 = vmul.f32 %v586_v27, %v568_v24  ;;  %v589_v33 = vmul.f32 %v583_v28, %v583_v28  ;;  %v578_v34 = vadd.f32 %v577_v30, %v477_v29 }
  0xf0   : > { %v599_v35 = vadd.f32 %v595_v31, %v573_v20  ;;  %v594_v36 = vmul.f32 0.044715, %v590_v32  ;;  %v593_v37 = vmul.f32 %v589_v33, %v583_v28  ;;  %v588_v38 = vmul.f32 %v578_v34, %v578_v34 }
  0xf2   : > { %v603_v39 = vmul.f32 0.7978846, %v599_v35  ;;  %v598_v40 = vadd.f32 %v594_v36, %v568_v24  ;;  %v597_v41 = vmul.f32 0.044715, %v593_v37  ;;  %v592_v42 = vmul.f32 %v588_v38, %v578_v34 }
  0xf4   : > { %v602_v43 = vmul.f32 0.7978846, %v598_v40  ;;  %v596_v44 = vmul.f32 0.044715, %v592_v42  ;;  %v601_v45 = vadd.f32 %v597_v41, %v583_v28  ;;  %1287 = vtanh.f32 %v603_v39 }
  0xf6   : > { %v600_v46 = vadd.f32 %v596_v44, %v578_v34  ;;  %v605_v47 = vmul.f32 0.7978846, %v601_v45  ;;  %1289 = vtanh.f32 %v602_v43 }
  0xf8   : > { %v604_v48 = vmul.f32 0.7978846, %v600_v46  ;;  %1291 = vtanh.f32 %v605_v47 }
  0xfa   : > { %1293 = vtanh.f32 %v604_v48 }
 0x101   : > { %v1288_v49 = vpop.eup %1287 }
 0x102   : > { %v611_v53 = vadd.f32 1.0, %v1288_v49 }
 0x103   : > { %v1290_v50 = vpop.eup %1289 }
 0x104   : > { %v610_v57 = vadd.f32 1.0, %v1290_v50  ;;  %v615_v60 = vmul.f32 0.5, %v611_v53 }
 0x105   : > { %v1292_v51 = vpop.eup %1291 }
 0x106   : > { %v613_v52 = vadd.f32 1.0, %v1292_v51  ;;  %v614_v62 = vmul.f32 0.5, %v610_v57  ;;  %v619_v63 = vmul.f32 %v615_v60, %v573_v20 }
 0x107   : > { %v1294_v54 = vpop.eup %1293 }
 0x108   : > { %v617_v55 = vmul.f32 0.5, %v613_v52  ;;  %v612_v56 = vadd.f32 1.0, %v1294_v54  ;;  %v618_v0 = vmul.f32 %v614_v62, %v568_v24  ;;  %v868_v62 = vld [vmem:[%s1760_s8] sm:$0xf] }
 0x10a   : > { %v621_v58 = vmul.f32 %v617_v55, %v583_v28  ;;  %v616_v59 = vmul.f32 0.5, %v612_v56 }
 0x10c   : > { %1177 = vmatpush3.msra.mxu1 %v621_v58  ;;  %v620_v61 = vmul.f32 %v616_v59, %v578_v34 }
 0x10d   : > { %1178 = vmatprep.subr.mxu1 %v1428_v16 }
 0x10e   : > { %1179 = vmatpush3.msra.mxu1 %v620_v61 }
 0x10f   : > { %1180 = vmatprep.subr.mxu1 %v1428_v16 }
 0x110   : > { %1181 = vmatpush3.msra.mxu1 %v619_v63 }
 0x111   : > { %1182 = vmatprep.subr.mxu1 %v1428_v16 }
 0x112   : > { %1183 = vmatpush3.msra.mxu1 %v618_v0 }
 0x113   : > { %1185 = vmatmul.mubr.msk.f32.vlgmr.msra.gmra.mxu1 %vm629_vm3, %v622_v1  ;;  %1195 = vmatprep.subr.mxu1 %v1428_v16 }
 0x114   : > { %1203 = vmatprep.mubr.msk.f32.mxu1 %vm1429_vm2, %v1428_v16 }
 0x1d3   : > { %v699_v5 = vpop.f32.mrf.mxu1 }
 0x1d4   : > { %v700_v7 = vadd.f32 %v699_v5, %v627_v3 }
 0x1d5   : > { %v1186_v8 = vpop.f32.mrf.mxu1 }
 0x1d6   : > { %v703_v9 = vadd.f32 %v700_v7, %v454_v4 }
 0x1d8   : > { %1187 = vmatprep.subr.msk.mxu0 %vm497_vm1, %v703_v9  ;;  %949 = vst [vmem:[%s1662_s23] sm:$0xf] %v703_v9 }
 0x1d9   : > { %1188 = vmatpush3.msk.msra.mxu0 %vm497_vm1, %v703_v9 }
 0x1da   : > { %1190 = vmatmul.mubr.msk.f32.vlgmr.msra.gmra.mxu0 %vm484_vm0, %v705_v10 }
 0x1db   : > { %1192 = vmatprep.mubr.msk.f32.mxu0 %vm484_vm0, %v706_v11 }
 0x1de   : > { %1193 = vmatmul.mubr.msk.f32.gmra.mxu0 %vm484_vm0, %v707_v12 }
 0x29a   : > { %v1191_v17 = vpop.f32.mrf.mxu0 }
 0x29b   : > { %v819_v18 = vadd.f32 %v1191_v17, %v720_v15 }
 0x29c   : > { %v813_v20 = vpop.f32.mrf.mxu0 }
 0x29d   : > { %v833_v21 = vmul.f32 %v819_v18, %v819_v18  ;;  %v814_v22 = vadd.f32 %v813_v20, %v715_v19 }
 0x29e   : > { %v1194_v23 = vpop.f32.mrf.mxu0 }
 0x29f   : > { %v837_v24 = vmul.f32 %v833_v21, %v819_v18  ;;  %v832_v25 = vmul.f32 %v814_v22, %v814_v22  ;;  %v829_v26 = vadd.f32 %v1194_v23, %v730_v13 }
 0x2a0   : > { %v823_v27 = vpop.f32.mrf.mxu0 }
 0x2a1   : > { %v841_v28 = vmul.f32 0.044715, %v837_v24  ;;  %v836_v29 = vmul.f32 %v832_v25, %v814_v22  ;;  %v835_v30 = vmul.f32 %v829_v26, %v829_v26  ;;  %v824_v31 = vadd.f32 %v823_v27, %v725_v14 }
 0x2a3   : > { %v845_v32 = vadd.f32 %v841_v28, %v819_v18  ;;  %v840_v33 = vmul.f32 0.044715, %v836_v29  ;;  %v839_v34 = vmul.f32 %v835_v30, %v829_v26  ;;  %v834_v35 = vmul.f32 %v824_v31, %v824_v31 }
 0x2a5   : > { %v849_v36 = vmul.f32 0.7978846, %v845_v32  ;;  %v844_v37 = vadd.f32 %v840_v33, %v814_v22  ;;  %v843_v38 = vmul.f32 0.044715, %v839_v34  ;;  %v838_v39 = vmul.f32 %v834_v35, %v824_v31 }
 0x2a7   : > { %v848_v40 = vmul.f32 0.7978846, %v844_v37  ;;  %v847_v41 = vadd.f32 %v843_v38, %v829_v26  ;;  %v842_v42 = vmul.f32 0.044715, %v838_v39  ;;  %1295 = vtanh.f32 %v849_v36 }
 0x2a9   : > { %v851_v43 = vmul.f32 0.7978846, %v847_v41  ;;  %v846_v44 = vadd.f32 %v842_v42, %v824_v31  ;;  %1297 = vtanh.f32 %v848_v40 }
 0x2ab   : > { %1299 = vtanh.f32 %v851_v43  ;;  %v850_v45 = vmul.f32 0.7978846, %v846_v44 }
 0x2ad   : > { %1301 = vtanh.f32 %v850_v45 }
 0x2b4   : > { %v1296_v46 = vpop.eup %1295 }
 0x2b5   : > { %v857_v50 = vadd.f32 1.0, %v1296_v46 }
 0x2b6   : > { %v1298_v47 = vpop.eup %1297 }
 0x2b7   : > { %v856_v54 = vadd.f32 1.0, %v1298_v47  ;;  %v861_v57 = vmul.f32 0.5, %v857_v50 }
 0x2b8   : > { %v1300_v48 = vpop.eup %1299 }
 0x2b9   : > { %v859_v49 = vadd.f32 1.0, %v1300_v48  ;;  %v860_v59 = vmul.f32 0.5, %v856_v54  ;;  %v865_v60 = vmul.f32 %v861_v57, %v819_v18 }
 0x2ba   : > { %v1302_v51 = vpop.eup %1301 }
 0x2bb   : > { %v863_v52 = vmul.f32 0.5, %v859_v49  ;;  %v858_v53 = vadd.f32 1.0, %v1302_v51  ;;  %v864_v61 = vmul.f32 %v860_v59, %v814_v22 }
 0x2bd   : > { %v867_v55 = vmul.f32 %v863_v52, %v829_v26  ;;  %v862_v56 = vmul.f32 0.5, %v858_v53 }
 0x2bf   : > { %1196 = vmatpush3.msra.mxu1 %v867_v55  ;;  %v866_v58 = vmul.f32 %v862_v56, %v824_v31 }
 0x2c0   : > { %1197 = vmatprep.subr.mxu1 %v1428_v16 }
 0x2c1   : > { %1198 = vmatpush3.msra.mxu1 %v866_v58 }
 0x2c2   : > { %1199 = vmatprep.subr.mxu1 %v1428_v16 }
 0x2c3   : > { %1200 = vmatpush3.msra.mxu1 %v865_v60 }
 0x2c4   : > { %1201 = vmatprep.subr.mxu1 %v1428_v16 }
 0x2c5   : > { %1202 = vmatpush3.msra.mxu1 %v864_v61 }
 0x2c6   : > { %1204 = vmatmul.mubr.msk.f32.vlgmr.msra.gmra.mxu1 %vm629_vm3, %v868_v62 }
 0x2c7   : > { %1316 = shalt.err (!%p1313_p7)
}
 0x2c8   : > { %s1317_s23 = scalar_lea.hbm %s970_s13, 64  ;;  %s1321_s29 = scalar_lea.hbm %s1762_s10, 256 }
 0x2c9   : > { %p1318_p9 = scmp.ne.s32.totalorder %s970_s13, %s1317_s23  ;;  %p1322_p12 = scmp.lt.s32.totalorder %s970_s13, %s1762_s10 }
 0x2ca   : > { %p1323_p13 = scmp.lt.s32.totalorder %s1321_s29, %s1317_s23 }
 0x2cb   : > { %p1319_p10 = pnand %p1318_p9, %p1543_p3 }
 0x2cc   : > { %p1324_p0 = por %p1323_p13, %p1322_p12 }
 0x2cd   : > { %p1320_p11 = pneg %p1319_p10 }
 0x2cf   : > { %p1325_p1 = pnand %p1324_p0, %p1320_p11 }
 0x2d1   : > { %1328 = shalt.err (!%p1325_p1)
}
 0x2d2   : > { %1206 = dma.vmem_to_hbm [thread:$0]  (%p1543_p3), %s973_s28, 64, %s970_s13, %s952_s27   ;;  %v873_v16 = vpop.permute.xlu1 %872 }
 0x2d3   : > { %s1781_s26 = sshll.u32 %s1645_s22, 2  ;;  %s1782_s0 = sshll.u32 %s1681_s14, 6 }
 0x2d4   : > { %s437_s16 = scalar_lea.vmem [#allocation4], %s1781_s26  ;;  %s985_s23 = scalar_lea.hbm %s1763_s11, %s1782_s0 }
 0x2d5   : > { %s987_s21 = sshll.u32 %s437_s16, 4  ;;  %s957_s25 = scalar_lea.sflag [#allocation5], %s1645_s22  ;;  %s988_s21 = int_to_ptr.vmem [resolvable:$true] %s987_s21 }
 0x2d6   : > { %s1329_s15 = scalar_lea.vmem %s988_s21, 64  ;;  %s1431_s28 = smov [#allocation4]  }
 0x2d7   : > { %p1330_p2 = scmp.ne.s32.totalorder %s988_s21, %s1329_s15  ;;  %s1333_s13 = sshll.u32 %s1431_s28, 4  ;;  %s1334_s13 = int_to_ptr.vmem [resolvable:$false] %s1333_s13 }
 0x2d8   : > { %s1335_s27 = scalar_lea.vmem %s1334_s13, 128  ;;  %p1336_p6 = scmp.lt.s32.totalorder %s988_s21, %s1334_s13 }
 0x2d9   : > { %p1331_p4 = pnand %p1330_p2, %p1543_p3  ;;  %p1337_p7 = scmp.lt.s32.totalorder %s1335_s27, %s1329_s15 }
 0x2db   : > { %p1332_p5 = pneg %p1331_p4  ;;  %p1338_p9 = por %p1337_p7, %p1336_p6 }
 0x2dd   : > { %p1339_p10 = pnand %p1338_p9, %p1332_p5 }
 0x386   : > { %v944_v63 = vpop.f32.mrf.mxu1 }
 0x387   : > { %v945_v0 = vadd.f32 %v944_v63, %v873_v16 }
 0x388   : > { %v1205_v1 = vpop.f32.mrf.mxu1 }
 0x389   : > { %v948_v2 = vadd.f32 %v945_v0, %v1591_v6 }
 0x38b   : > { %950 = vst [vmem:[%s437_s16] sm:$0xf] %v948_v2 }
 0x38c   : > { %1342 = shalt.err (!%p1339_p10)
}
 0x38d   : > { %s1343_s14 = scalar_lea.hbm %s985_s23, 64  ;;  %s1347_s26 = scalar_lea.hbm %s1763_s11, 256 }
 0x38e   : > { %p1344_p11 = scmp.ne.s32.totalorder %s985_s23, %s1343_s14  ;;  %p1348_p0 = scmp.lt.s32.totalorder %s985_s23, %s1763_s11 }
 0x38f   : > { %p1349_p1 = scmp.lt.s32.totalorder %s1347_s26, %s1343_s14 }
 0x390   : > { %p1345_p12 = pnand %p1344_p11, %p1543_p3 }
 0x391   : > { %p1350_p2 = por %p1349_p1, %p1348_p0 }
 0x392   : > { %p1346_p13 = pneg %p1345_p12 }
 0x394   : > { %p1351_p4 = pnand %p1350_p2, %p1346_p13 }
 0x396   : > { %1354 = shalt.err (!%p1351_p4)
}
 0x397   : > { %1207 = dma.vmem_to_hbm [thread:$0]  (%p1543_p3), %s988_s21, 64, %s985_s23, %s957_s25  }
 0x398 PF: > { %p1217_p5 = scmp.ge.s32.totalorder %s1425_s24, 2  ;;  %s999_s19 = sand.u32 1, %s1397_s17  }
 0x399   : > { %s1000_s20 = scalar_lea.sflag [#allocation3], %s999_s19 }
 0x39a   : > { %p1211_p6 = pnand %p1217_p5, %p1552_p8 }
 0x39c   : > { %p1212_p7 = pneg %p1211_p6 }
 0x39e   : > { %1388 = dma.done.wait (%p1212_p7), %s1000_s20, 64  }
 0x39f   : > { %1390 = vsyncadd (%p1212_p7), %s1000_s20, 4294967232  ;;  %s1009_s15 = scalar_lea.sflag [#allocation5], %s999_s19 }
 0x3a0   : > { %1392 = dma.done.wait (%p1212_p7), %s1009_s15, 64  }
 0x3a1   : > { %1394 = vsyncadd (%p1212_p7), %s1009_s15, 4294967232  ;;  %s28_s24 = sadd.s32 1, %s1425_s24   ;;  %s1783_s30 = sld [smem:[#allocation8_spill]] }
 0x3a2   : > { %p25_p9 = scmp.ge.s32.totalorder %s28_s24, 6   ;;  %s1784_s19 = sld [smem:[#allocation13_spill]] }
 0x3a3   : > { %s1785_s20 = sld [smem:[#allocation9_spill]]  ;;  %s1789_s17 = smov %s1401_s18 }
 0x3a4   : > { %s1786_s21 = sld [smem:[#allocation10_spill]]  ;;  %27 = sbr.rel (!%p25_p9) target bundleno = 9 (0x9), region = 115 }
 0x3a5   : > { %s1787_s22 = sld [smem:[#allocation11_spill]] }
 0x3a6   : > { %s1788_s23 = sld [smem:[#allocation12_spill]] }
 0x3a7   : > { %s1790_s18 = smov %s1783_s30 }
 0x3a9   :  { %1014 = vsyncpa [#allocation3], 1 }
 0x3aa   :  { %1016 = vsyncpa [#allocation3 + $0x1], 1 }
 0x3ab   :  { %1017 = vsyncpa [#allocation5], 1 }
 0x3ac   :  { %1019 = vsyncpa [#allocation5 + $0x1], 1 }

</bundles_post_ra>
